<compile_context>
chip_gen: v6e
topology: v6e:2x2x1
jax: 0.10.0
libtpu: 0.0.40
codegen_flags: <defaults>
</compile_context>

<pallas_src>
import functools

import jax
import jax.numpy as jnp
from jax.experimental import pallas as pl
from jax.experimental.pallas import tpu as pltpu


def _se_kernel(x_ref, w1t_ref, b1_ref, w2_ref, b2_ref, o_ref, *, inv_hw):
    # x_ref block: (1, C, HWpad); weights are resident: w1t (C, Cmid),
    # b1 (1, Cmid), w2 (C, Cmid), b2 (C, 1).
    xf = x_ref[0].astype(jnp.float32)                            # (C, HWpad)

    # Adaptive average pool: f32 sum over lanes * precomputed 1/(H*W).
    pooled = jnp.sum(xf, axis=-1, keepdims=True) * inv_hw        # (C, 1)

    # FC1 (BN folded) + ReLU, computed on the VPU/XLU:
    #   s1[0, m] = sum_c W1'[m, c] * pooled[c]
    s1 = jnp.sum(w1t_ref[...] * pooled, axis=0, keepdims=True) + b1_ref[...]
    s1 = jnp.maximum(s1, 0.0)                                    # (1, Cmid)

    # FC2 (BN folded):  s2[k, 0] = sum_m W2'[k, m] * s1[m]
    s2 = jnp.sum(w2_ref[...] * s1, axis=1, keepdims=True) + b2_ref[...]  # (C, 1)

    # hsigmoid: relu6(s + 3) * (1/6)  (multiply, not divide)
    scale = jnp.clip(s2 + 3.0, 0.0, 6.0) * (1.0 / 6.0)           # (C, 1)

    o_ref[0] = (xf * scale).astype(o_ref.dtype)


def _fold_bn_into_conv(w, gamma, beta, mean, var, eps):
    """Fold eval-mode BatchNorm into a bias-free 1x1 conv: w' = s*w, b' = beta - s*mean."""
    scale = gamma.astype(jnp.float32) * jax.lax.rsqrt(var.astype(jnp.float32) + eps)
    w_f = w.astype(jnp.float32) * scale[:, None]
    b_f = beta.astype(jnp.float32) - mean.astype(jnp.float32) * scale
    return w_f, b_f


def se_module(x, w1, bn1, w2, bn2, *, eps=1e-5):
    """x: (N, C, H, W); w1: (C//r, C); w2: (C, C//r); bn*: (gamma, beta, mean, var)."""
    N, C, H, W = x.shape
    Cmid = w1.shape[0]
    HW = H * W
    HWpad = ((HW + 127) // 128) * 128

    # Fold BN params into the 1x1 convs (wrapper-time, accuracy neutral).
    w1f, b1f = _fold_bn_into_conv(w1, *bn1, eps)   # (Cmid, C), (Cmid,)
    w2f, b2f = _fold_bn_into_conv(w2, *bn2, eps)   # (C, Cmid), (C,)
    w1t = jnp.transpose(w1f)                        # (C, Cmid) for sublane-reduce FC1
    b1r = b1f.reshape(1, Cmid)
    b2c = b2f.reshape(C, 1)

    # Flatten HW onto the lane axis; zero-pad to a multiple of 128.
    xr = x.reshape(N, C, HW)
    if HWpad != HW:
        xr = jnp.pad(xr, ((0, 0), (0, 0), (0, HWpad - HW)))

    # VMEM budget: double-buffered x and out blocks + resident params + slack.
    blk_bytes = C * HWpad * xr.dtype.itemsize
    param_bytes = 4 * (2 * C * Cmid + Cmid + C)
    vmem_limit = int(min(max(6 * blk_bytes + 4 * param_bytes + (1 << 20),
                             16 * (1 << 20)),
                         64 * (1 << 20)))
    # TODO(synk): add a two-phase (sum pass + scale pass) HW-tiled fallback for
    # images whose (C, HW) slab exceeds the per-core VMEM budget (v7x: 64 MiB).

    kernel = functools.partial(_se_kernel, inv_hw=float(1.0 / HW))

    out = pl.pallas_call(
        kernel,
        out_shape=jax.ShapeDtypeStruct((N, C, HWpad), x.dtype),
        grid_spec=pltpu.PrefetchScalarGridSpec(
            num_scalar_prefetch=0,
            grid=(N,),
            in_specs=[
                pl.BlockSpec((1, C, HWpad), lambda n: (n, 0, 0)),   # x (streamed)
                pl.BlockSpec((C, Cmid), lambda n: (0, 0)),          # W1'.T (resident)
                pl.BlockSpec((1, Cmid), lambda n: (0, 0)),          # b1    (resident)
                pl.BlockSpec((C, Cmid), lambda n: (0, 0)),          # W2'   (resident)
                pl.BlockSpec((C, 1), lambda n: (0, 0)),             # b2    (resident)
            ],
            out_specs=pl.BlockSpec((1, C, HWpad), lambda n: (n, 0, 0)),
        ),
        compiler_params=pltpu.CompilerParams(
            dimension_semantics=("parallel",),
            vmem_limit_bytes=vmem_limit,
        ),
    )(xr, w1t, b1r, w2f, b2c)

    if HWpad != HW:
        out = out[..., :HW]
    return out.reshape(N, C, H, W)


def se_reference(x, w1, bn1, w2, bn2, *, eps=1e-5):
    """Pure-JAX eval-mode reference matching the PyTorch module."""
    g1, be1, m1, v1 = bn1
    g2, be2, m2, v2 = bn2
    pooled = jnp.mean(x, axis=(2, 3))                      # (N, C)
    s = pooled @ w1.T                                      # (N, Cmid)
    s = (s - m1) * (g1 / jnp.sqrt(v1 + eps)) + be1
    s = jnp.maximum(s, 0.0)
    s = s @ w2.T                                           # (N, C)
    s = (s - m2) * (g2 / jnp.sqrt(v2 + eps)) + be2
    s = jnp.clip(s + 3.0, 0.0, 6.0) / 6.0
    return x * s[:, :, None, None]


if __name__ == "__main__":
    key = jax.random.PRNGKey(0)
    N, C, H, W = 2, 16, 16, 16
    reduction = 4
    Cmid = C // reduction

    ks = jax.random.split(key, 11)
    x = jax.random.normal(ks[0], (N, C, H, W), jnp.float32)
    w1 = jax.random.normal(ks[1], (Cmid, C), jnp.float32) * 0.2
    g1 = jax.random.uniform(ks[2], (Cmid,), jnp.float32, 0.5, 1.5)
    be1 = jax.random.normal(ks[3], (Cmid,), jnp.float32) * 0.1
    m1 = jax.random.normal(ks[4], (Cmid,), jnp.float32) * 0.1
    v1 = jax.random.uniform(ks[5], (Cmid,), jnp.float32, 0.5, 1.5)
    w2 = jax.random.normal(ks[6], (C, Cmid), jnp.float32) * 0.2
    g2 = jax.random.uniform(ks[7], (C,), jnp.float32, 0.5, 1.5)
    be2 = jax.random.normal(ks[8], (C,), jnp.float32) * 0.1
    m2 = jax.random.normal(ks[9], (C,), jnp.float32) * 0.1
    v2 = jax.random.uniform(ks[10], (C,), jnp.float32, 0.5, 1.5)

    bn1 = (g1, be1, m1, v1)
    bn2 = (g2, be2, m2, v2)

    out = se_module(x, w1, bn1, w2, bn2)
    out = jax.block_until_ready(out)

    ref = se_reference(x, w1, bn1, w2, bn2)
    if not jnp.allclose(out, ref, atol=2e-5, rtol=2e-5):
        max_err = float(jnp.max(jnp.abs(out - ref)))
        raise AssertionError(f"Pallas SE output mismatch, max abs err = {max_err}")

    print("KERNEL_OK")
</pallas_src>

<mosaic_0001>
module attributes {stable_mosaic.version = 11 : i64} {
  func.func @_se_kernel(%arg0: i32, %arg1: memref<1x16x256xf32, #tpu.memory_space<vmem>>, %arg2: memref<16x4xf32, #tpu.memory_space<vmem>>, %arg3: memref<1x4xf32, #tpu.memory_space<vmem>>, %arg4: memref<16x4xf32, #tpu.memory_space<vmem>>, %arg5: memref<16x1xf32, #tpu.memory_space<vmem>>, %arg6: memref<1x16x256xf32, #tpu.memory_space<vmem>>) attributes {dimension_semantics = [#tpu.dimension_semantics<parallel>], iteration_bounds = array<i64: 2>, scalar_prefetch = 0 : i64, scratch_operands = 0 : i64, tpu.core_type = #tpu.core_type<tc>, window_params = [{transform_indices = @transform_0, window_bounds = array<i64: 1, 16, 256>}, {pipeline_mode = #tpu.pipeline_mode<synchronous>, transform_indices = @transform_1, window_bounds = array<i64: 16, 4>}, {pipeline_mode = #tpu.pipeline_mode<synchronous>, transform_indices = @transform_2, window_bounds = array<i64: 1, 4>}, {pipeline_mode = #tpu.pipeline_mode<synchronous>, transform_indices = @transform_3, window_bounds = array<i64: 16, 4>}, {pipeline_mode = #tpu.pipeline_mode<synchronous>, transform_indices = @transform_4, window_bounds = array<i64: 16, 1>}, {transform_indices = @transform_5, window_bounds = array<i64: 1, 16, 256>}]} {
    %c0 = arith.constant 0 : index
    %c0_0 = arith.constant 0 : index
    %c0_1 = arith.constant 0 : index
    %0 = vector.load %arg1[%c0, %c0_0, %c0_1] : memref<1x16x256xf32, #tpu.memory_space<vmem>>, vector<1x16x256xf32>
    %1 = vector.shape_cast %0 : vector<1x16x256xf32> to vector<16x256xf32>
    %cst = arith.constant dense<0.000000e+00> : vector<16xf32>
    %2 = vector.multi_reduction <add>, %1, %cst [1] : vector<16x256xf32> to vector<16xf32>
    %3 = vector.shape_cast %2 : vector<16xf32> to vector<16x1xf32>
    %cst_2 = arith.constant 3.906250e-03 : f32
    %4 = vector.broadcast %cst_2 : f32 to vector<16x1xf32>
    %5 = arith.mulf %3, %4 : vector<16x1xf32>
    %c0_3 = arith.constant 0 : index
    %c0_4 = arith.constant 0 : index
    %6 = vector.load %arg2[%c0_3, %c0_4] : memref<16x4xf32, #tpu.memory_space<vmem>>, vector<16x4xf32>
    %7 = vector.broadcast %5 : vector<16x1xf32> to vector<16x4xf32>
    %8 = arith.mulf %6, %7 : vector<16x4xf32>
    %cst_5 = arith.constant dense<0.000000e+00> : vector<4xf32>
    %9 = vector.multi_reduction <add>, %8, %cst_5 [0] : vector<16x4xf32> to vector<4xf32>
    %10 = vector.shape_cast %9 : vector<4xf32> to vector<1x4xf32>
    %c0_6 = arith.constant 0 : index
    %c0_7 = arith.constant 0 : index
    %11 = vector.load %arg3[%c0_6, %c0_7] : memref<1x4xf32, #tpu.memory_space<vmem>>, vector<1x4xf32>
    %12 = arith.addf %10, %11 : vector<1x4xf32>
    %cst_8 = arith.constant 0.000000e+00 : f32
    %13 = vector.broadcast %cst_8 : f32 to vector<1x4xf32>
    %14 = arith.maximumf %12, %13 : vector<1x4xf32>
    %c0_9 = arith.constant 0 : index
    %c0_10 = arith.constant 0 : index
    %15 = vector.load %arg4[%c0_9, %c0_10] : memref<16x4xf32, #tpu.memory_space<vmem>>, vector<16x4xf32>
    %16 = vector.broadcast %14 : vector<1x4xf32> to vector<16x4xf32>
    %17 = arith.mulf %15, %16 : vector<16x4xf32>
    %cst_11 = arith.constant dense<0.000000e+00> : vector<16xf32>
    %18 = vector.multi_reduction <add>, %17, %cst_11 [1] : vector<16x4xf32> to vector<16xf32>
    %19 = vector.shape_cast %18 : vector<16xf32> to vector<16x1xf32>
    %c0_12 = arith.constant 0 : index
    %c0_13 = arith.constant 0 : index
    %20 = vector.load %arg5[%c0_12, %c0_13] : memref<16x1xf32, #tpu.memory_space<vmem>>, vector<16x1xf32>
    %21 = arith.addf %19, %20 : vector<16x1xf32>
    %cst_14 = arith.constant 3.000000e+00 : f32
    %22 = vector.broadcast %cst_14 : f32 to vector<16x1xf32>
    %23 = arith.addf %21, %22 : vector<16x1xf32>
    %cst_15 = arith.constant 0.000000e+00 : f32
    %cst_16 = arith.constant 6.000000e+00 : f32
    %24 = vector.broadcast %cst_15 : f32 to vector<16x1xf32>
    %25 = arith.maximumf %24, %23 : vector<16x1xf32>
    %26 = vector.broadcast %cst_16 : f32 to vector<16x1xf32>
    %27 = arith.minimumf %26, %25 : vector<16x1xf32>
    %cst_17 = arith.constant 0.166666672 : f32
    %28 = vector.broadcast %cst_17 : f32 to vector<16x1xf32>
    %29 = arith.mulf %27, %28 : vector<16x1xf32>
    %30 = vector.broadcast %29 : vector<16x1xf32> to vector<16x256xf32>
    %31 = arith.mulf %1, %30 : vector<16x256xf32>
    %c0_18 = arith.constant 0 : index
    %c0_19 = arith.constant 0 : index
    %c0_20 = arith.constant 0 : index
    %32 = vector.load %arg6[%c0_18, %c0_19, %c0_20] : memref<1x16x256xf32, #tpu.memory_space<vmem>>, vector<1x16x256xf32>
    %33 = vector.shape_cast %32 : vector<1x16x256xf32> to vector<16x256xf32>
    %34 = vector.shape_cast %31 : vector<16x256xf32> to vector<1x16x256xf32>
    tpu.vector_store %arg6[%c0_18, %c0_19, %c0_20], %34 {strides = array<i32>} : memref<1x16x256xf32, #tpu.memory_space<vmem>>, vector<1x16x256xf32>,
    return
  }
  func.func @transform_0(%arg0: i32) -> (i32, i32, i32) {
    %c0_i32 = arith.constant 0 : i32
    %c0_i32_0 = arith.constant 0 : i32
    %c0_i32_1 = arith.constant 0 : i32
    return %arg0, %c0_i32, %c0_i32_0 : i32, i32, i32
  }
  func.func @transform_1(%arg0: i32) -> (i32, i32) {
    %c0_i32 = arith.constant 0 : i32
    %c0_i32_0 = arith.constant 0 : i32
    %c0_i32_1 = arith.constant 0 : i32
    return %c0_i32, %c0_i32_0 : i32, i32
  }
  func.func @transform_2(%arg0: i32) -> (i32, i32) {
    %c0_i32 = arith.constant 0 : i32
    %c0_i32_0 = arith.constant 0 : i32
    %c0_i32_1 = arith.constant 0 : i32
    return %c0_i32, %c0_i32_0 : i32, i32
  }
  func.func @transform_3(%arg0: i32) -> (i32, i32) {
    %c0_i32 = arith.constant 0 : i32
    %c0_i32_0 = arith.constant 0 : i32
    %c0_i32_1 = arith.constant 0 : i32
    return %c0_i32, %c0_i32_0 : i32, i32
  }
  func.func @transform_4(%arg0: i32) -> (i32, i32) {
    %c0_i32 = arith.constant 0 : i32
    %c0_i32_0 = arith.constant 0 : i32
    %c0_i32_1 = arith.constant 0 : i32
    return %c0_i32, %c0_i32_0 : i32, i32
  }
  func.func @transform_5(%arg0: i32) -> (i32, i32, i32) {
    %c0_i32 = arith.constant 0 : i32
    %c0_i32_0 = arith.constant 0 : i32
    %c0_i32_1 = arith.constant 0 : i32
    return %arg0, %c0_i32, %c0_i32_0 : i32, i32, i32
  }
}

</mosaic_0001>

<bundles_post_ra>
// kernel: tpu_custom_call.1
= control target key start
LH: loop header
LB: loop body
LE: loop exit
PB: predicated region body
PF: predicated region fallthrough
CT: control target
= control target key end

     0   :  { %10 = vsyncpa [#allocation3], 0  ;;  %s802_s0 = inlined_call_operand.hbm [shape: f32[2,16,256], index: 0, kind: input, shape index: {}]   ;;  %s803_s1 = inlined_call_operand.vmem [shape: f32[16,4], index: 1, kind: input, shape index: {}]   ;;  %s804_s2 = inlined_call_operand.vmem [shape: f32[1,4], index: 2, kind: input, shape index: {}]   ;;  %s805_s3 = inlined_call_operand.vmem [shape: f32[16,4], index: 3, kind: input, shape index: {}]   ;;  %s806_s4 = inlined_call_operand.vmem [shape: f32[16,1], index: 4, kind: input, shape index: {}]   ;;  %s807_s5 = inlined_call_operand.hbm [shape: f32[2,16,256], index: 5, kind: output, shape index: {}]  }
   0x1   :  { %12 = vsyncpa [#allocation3 + $0x1], 0 }
   0x2   :  { %13 = vsyncpa [#allocation4], 0 }
   0x3   :  { %15 = vsyncpa [#allocation4 + $0x1], 0  ;;  %s603_s18 = smov 0   ;;  %s605_s19 = smov 0  }
   0x4   :  { %s607_s20 = smov 0   ;;  %s609_s21 = smov 0  }
   0x5 LB: > { %s624_s22 = sadd.s32 4294967295, %s564_s21   ;;  %s403_s23 = sadd.s32 4294967294, %s564_s21   ;;  %s564_s21 = sphi %s609_s21, %s822_s21   ;;  %s560_s20 = sphi %s607_s20, %s821_s20   ;;  %s556_s19 = sphi %s605_s19, %s820_s19   ;;  %s552_s18 = sphi %s603_s18, %s819_s18  }
   0x6   : > { %s628_s24 = sadd.s32 1, %s564_s21   ;;  %s28_s25 = sadd.s32 1, %s560_s20 }
   0x7   : > { %s25_s26 = ssub.s32 %s564_s21, %s628_s24  ;;  %p35_p0 = scmp.ne.s32.totalorder %s560_s20, %s556_s19 }
   0x8   : > { %p26_p1 = scmp.eq.s32.totalorder %s25_s26, 0  ;;  %p36_p2 = scmp.eq.s32.totalorder %s564_s21, 0 }
   0x9   : > { %p41_p3 = scmp.ne.s32.totalorder %s556_s19, %s552_s18  ;;  %p42_p4 = scmp.eq.s32.totalorder %s624_s22, 0 }
   0xa   : > { %s640_s27 = scalar_select %p26_p1, %s560_s20, %s28_s25  }
   0xb   : > { %p642_p5 = por %p36_p2, %p35_p0  ;;  %p646_p6 = por %p42_p4, %p41_p3 }
   0xc   : > { %p149_p7 = scmp.eq.s32.totalorder %s624_s22, 1  ;;  %p155_p8 = scmp.eq.s32.totalorder %s403_s23, 1 }
   0xd   : > { %s811_s29 = scalar_select %p646_p6, 1, 0 }
   0xe   : > { %p431_p10 = scmp.lt.s32.totalorder %s564_s21, 2  ;;  %p653_p11 = por %p149_p7, %p35_p0 }
   0xf   : > { %p657_p12 = por %p155_p8, %p41_p3  ;;  %s187_s7 = sand.u32 1, %s560_s20  }
  0x10   : > { %s812_s30 = scalar_select %p653_p11, 1, 0 }
  0x11   : > { %s813_s6 = scalar_select %p657_p12, 1, 0 }
  0x12   : > { %s417_s8 = sshll.u32 %s564_s21, 9  ;;  %s406_s9 = sshll.u32 %s187_s7, 5 }
  0x13   : > { %s666_s12 = scalar_lea.hbm %s802_s0, %s417_s8  ;;  %s191_s13 = scalar_lea.vmem [#allocation2], %s406_s9 }
  0x14   : > { %s198_s14 = sshll.u32 %s191_s13, 4  ;;  %p670_p13 = pnand %p431_p10, %p642_p5  ;;  %s674_s14 = int_to_ptr.vmem [resolvable:$true] %s198_s14 }
  0x15   : > { %s676_s16 = scalar_lea.sflag [#allocation3], %s187_s7  ;;  %s472_s17 = scalar_lea.hbm %s666_s12, 512 }
  0x16   : > { %p473_p0 = scmp.ne.s32.totalorder %s666_s12, %s472_s17  ;;  %p474_p1 = pneg %p670_p13 }
  0x17   : > { %s477_s26 = scalar_lea.hbm %s802_s0, 1024  ;;  %p478_p4 = scmp.lt.s32.totalorder %s666_s12, %s802_s0 }
  0x18   : > { %p475_p2 = pnand %p474_p1, %p473_p0  ;;  %p479_p5 = scmp.lt.s32.totalorder %s477_s26, %s472_s17 }
  0x1a   : > { %p476_p3 = pneg %p475_p2  ;;  %p480_p7 = por %p479_p5, %p478_p4 }
  0x1c   : > { %p481_p8 = pnand %p480_p7, %p476_p3 }
  0x1e   : > { %484 = shalt.err (!%p481_p8)
}
  0x1f   : > { %s485_s7 = scalar_lea.vmem %s674_s14, 512  ;;  %s566_s9 = smov [#allocation2]  }
  0x20   : > { %p486_p10 = scmp.ne.s32.totalorder %s674_s14, %s485_s7  ;;  %s490_s10 = sshll.u32 %s566_s9, 4  ;;  %s491_s10 = int_to_ptr.vmem [resolvable:$false] %s490_s10 }
  0x21   : > { %s492_s11 = scalar_lea.vmem %s491_s10, 1024  ;;  %p493_p2 = scmp.lt.s32.totalorder %s674_s14, %s491_s10 }
  0x22   : > { %p488_p9 = pnand %p486_p10, %p474_p1  ;;  %p494_p12 = scmp.lt.s32.totalorder %s492_s11, %s485_s7 }
  0x24   : > { %p489_p0 = pneg %p488_p9  ;;  %p495_p11 = por %p494_p12, %p493_p2 }
  0x26   : > { %p496_p6 = pnand %p495_p11, %p489_p0 }
  0x28   : > { %499 = shalt.err (!%p496_p6)
}
  0x29   : > { %s567_s13 = smov 256   ;;  %s568_s17 = smov 16  }
  0x2a   : > { %426 = dma.hbm_to_vmem [thread:$0]  (!%p670_p13), %s666_s12, 512, %s674_s14, %s676_s16, %s567_s13, %s567_s13, %s568_s17  }
  0x2b   : > { %p409_p9 = scmp.ge.s32.totalorder %s564_s21, 1  ;;  %p206_p1 = scmp.lt.s32.totalorder %s564_s21, 3 }
  0x2d   : > { %p207_p3 = pnand %p409_p9, %p206_p1 }
  0x2e   : > { %s700_s23 = sand.u32 (!%p207_p3), 1, %s556_s19   ;;  %p815_p6 = scmp.ne.s32.totalorder (!%p207_p3), %s811_s29, 0 }
  0x2f   : > { %210 = sbr.rel (%p207_p3) target bundleno = 518 (0x206), region = 40  ;;  %s410_s25 = sshll.u32 (!%p207_p3), %s700_s23, 5 }
  0x30   : > { %s213_s26 = scalar_lea.sflag (!%p207_p3), [#allocation3], %s700_s23  ;;  %s216_s28 = scalar_lea.vmem (!%p207_p3), [#allocation2], %s410_s25 }
  0x34   : > { %543 = dma.done.wait (%p815_p6), %s213_s26, 512  }
  0x35   : > { %545 = vsyncadd (%p815_p6), %s213_s26, 4294966784  ;;  %v710_v0 = vld [vmem:[%s216_s28] sm:$0xff]  ;;  %v712_v1 = vld [vmem:[%s216_s28 + $0x8] sm:$0xff]  ;;  %vm259_vm0 = vcmask 31744   ;;  %v274_v20 = vlaneseq  ;;  %v569_v36 = vmov 0   ;;  %s242_s29 = scalar_lea.vmem [#allocation5], %s410_s25 }
  0x36   : > { %v714_v2 = vld [vmem:[%s216_s28 + $0x10] sm:$0xff]  ;;  %v247_v3 = vadd.f32 %v712_v1, %v710_v0  ;;  %v718_v4 = vld [vmem:[%s216_s28 + $0x18] sm:$0xff]  ;;  %v255_v8 = vld [vmem:[%s803_s1] sm:$0xff]  ;;  %470 = vset.pattern.permute.xlu0 %v569_v36  ;;  %471 = vset.pattern.permute.xlu1 %v569_v36  ;;  %s330_s12 = sshll.u32 %s242_s29, 4  ;;  %s418_s14 = sshll.u32 %s624_s22, 9  ;;  %s752_s12 = int_to_ptr.vmem [resolvable:$true] %s330_s12 }
  0x37   : > { %v250_v5 = vadd.f32 %v718_v4, %v714_v2  ;;  %v256_v9 = vld [vmem:[%s803_s1 + $0x8] sm:$0xff]  ;;  %v275_v23 = vshrl.u32 %v274_v20, 7  ;;  %v269_v24 = vld [vmem:[%s804_s2] sm:$0x1]  ;;  %s757_s25 = scalar_lea.hbm %s807_s5, %s418_s14  ;;  %s317_s22 = scalar_lea.sflag [#allocation4], %s700_s23 }
  0x38   : > { %248 = vadd.xlane.f32.xlu0 %v247_v3  ;;  %v272_v29 = vld [vmem:[%s805_s3] sm:$0xff]  ;;  %v273_v31 = vld [vmem:[%s805_s3 + $0x8] sm:$0xff]  ;;  %s500_s8 = scalar_lea.vmem %s752_s12, 512  ;;  %p816_p12 = scmp.ne.s32.totalorder %s812_s30, 0 }
  0x39   : > { %v276_v27 = vsub.s32 0, %v275_v23  ;;  %v286_v37 = vld [vmem:[%s806_s4] sm:$0xff]  ;;  %v287_v40 = vld [vmem:[%s806_s4 + $0x8] sm:$0xff]  ;;  %p501_p11 = scmp.ne.s32.totalorder %s752_s12, %s500_s8  ;;  %s570_s7 = smov [#allocation5]  }
  0x3a   : > { %s504_s9 = sshll.u32 %s570_s7, 4  ;;  %s505_s9 = int_to_ptr.vmem [resolvable:$false] %s504_s9 }
  0x3b   : > { %p502_p13 = pnand %p501_p11, %p816_p12  ;;  %s506_s10 = scalar_lea.vmem %s505_s9, 1024 }
  0x3c   : > { %251 = vadd.xlane.f32.xlu0 %v250_v5  ;;  %p507_p5 = scmp.lt.s32.totalorder %s752_s12, %s505_s9  ;;  %p508_p7 = scmp.lt.s32.totalorder %s506_s10, %s500_s8 }
  0x3d   : > { %p503_p4 = pneg %p502_p13 }
  0x3e   : > { %p509_p8 = por %p508_p7, %p507_p5 }
  0x40   : > { %p510_p10 = pnand %p509_p8, %p503_p4 }
  0xc1   : > { %v249_v6 = vpop.xlane.xlu0 %248 }
  0xc2   : > { %v253_v7 = vmul.f32 0.00390625, %v249_v6 }
  0xc4   : > { %v257_v11 = vmul.f32 %v255_v8, %v253_v7 }
  0xc5   : > { %v252_v10 = vpop.xlane.xlu0 %251 }
  0xc6   : > { %v254_v12 = vmul.f32 0.00390625, %v252_v10  ;;  %v260_v14 = vsel %vm259_vm0, %v257_v11, 0.0 }
  0xc8   : > { %v258_v13 = vmul.f32 %v256_v9, %v254_v12 }
  0xca   : > { %v261_v15 = vsel %vm259_vm0, %v258_v13, 0.0 }
  0xcb   : > { %v262_v16 = vadd.f32 %v261_v15, %v260_v14 }
  0xcd   : > { %v263_v17 = vrot.slane %v262_v16, 4 }
  0xcf   : > { %v264_v18 = vadd.f32 %v263_v17, %v262_v16 }
  0xd1   : > { %v265_v19 = vrot.slane %v264_v18, 2 }
  0xd3   : > { %v266_v21 = vadd.f32 %v265_v19, %v264_v18 }
  0xd5   : > { %v267_v22 = vrot.slane %v266_v21, 1 }
  0xd7   : > { %v268_v25 = vadd.f32 %v267_v22, %v266_v21 }
  0xd9   : > { %v270_v26 = vadd.f32 %v269_v24, %v268_v25 }
  0xdb   : > { %v271_v28 = vmax.f32 %v270_v26, 0.0 }
  0xdd   : > { %v277_v30 = vrot.slane %v271_v28, %v276_v27 }
  0xdf   : > { %v278_v32 = vmul.f32 %v277_v30, %v272_v29  ;;  %v279_v34 = vmul.f32 %v277_v30, %v273_v31 }
  0xe1   : > { %v280_v33 = vsel %vm259_vm0, %v278_v32, 0.0  ;;  %v283_v35 = vsel %vm259_vm0, %v279_v34, 0.0 }
  0xe2   : > { %281 = vadd.xlane.f32.xlu1 %v280_v33 }
  0xe6   : > { %284 = vadd.xlane.f32.xlu1 %v283_v35 }
 0x16b   : > { %v282_v38 = vpop.xlane.xlu1 %281 }
 0x16c   : > { %v288_v39 = vadd.f32 %v286_v37, %v282_v38 }
 0x16e   : > { %v290_v41 = vadd.f32 3.0, %v288_v39 }
 0x16f   : > { %v285_v42 = vpop.xlane.xlu1 %284 }
 0x170   : > { %v292_v43 = vmax.f32 %v290_v41, 0.0  ;;  %v289_v44 = vadd.f32 %v287_v40, %v285_v42 }
 0x172   : > { %v294_v45 = vmin.f32 %v292_v43, 6.0  ;;  %v291_v46 = vadd.f32 3.0, %v289_v44 }
 0x174   : > { %v296_v47 = vmul.f32 0.16666667, %v294_v45  ;;  %v293_v48 = vmax.f32 %v291_v46, 0.0 }
 0x176   : > { %v295_v49 = vmin.f32 %v293_v48, 6.0  ;;  %300 = vperm.xlu0 %470, %v296_v47  }
 0x178   : > { %v297_v50 = vmul.f32 0.16666667, %v295_v49 }
 0x17a   : > { %305 = vperm.xlu1 %471, %v297_v50  }
 0x1f1   : > { %v301_v51 = vpop.permute.xlu0 %300 }
 0x1f2   : > { %v308_v52 = vmul.f32 %v301_v51, %v710_v0  ;;  %v309_v53 = vmul.f32 %v301_v51, %v712_v1 }
 0x1f4   : > { %312 = vst [vmem:[%s242_s29] sm:$0xff] %v308_v52  ;;  %313 = vst [vmem:[%s242_s29 + $0x8] sm:$0xff] %v309_v53 }
 0x1f5   : > { %v306_v54 = vpop.permute.xlu1 %305 }
 0x1f6   : > { %v310_v55 = vmul.f32 %v306_v54, %v714_v2  ;;  %v311_v56 = vmul.f32 %v306_v54, %v718_v4 }
 0x1f8   : > { %314 = vst [vmem:[%s242_s29 + $0x10] sm:$0xff] %v310_v55  ;;  %315 = vst [vmem:[%s242_s29 + $0x18] sm:$0xff] %v311_v56 }
 0x1f9   : > { %513 = shalt.err (!%p510_p10)
}
 0x1fa   : > { %s514_s11 = scalar_lea.hbm %s757_s25, 512  ;;  %s518_s26 = scalar_lea.hbm %s807_s5, 1024 }
 0x1fb   : > { %p515_p0 = scmp.ne.s32.totalorder %s757_s25, %s514_s11  ;;  %p519_p1 = scmp.lt.s32.totalorder %s757_s25, %s807_s5 }
 0x1fc   : > { %p520_p3 = scmp.lt.s32.totalorder %s518_s26, %s514_s11 }
 0x1fd   : > { %p516_p2 = pnand %p515_p0, %p816_p12 }
 0x1fe   : > { %p521_p6 = por %p520_p3, %p519_p1 }
 0x1ff   : > { %p517_p9 = pneg %p516_p2 }
 0x201   : > { %p522_p11 = pnand %p521_p6, %p517_p9 }
 0x203   : > { %525 = shalt.err (!%p522_p11)
}
 0x204   : > { %s571_s14 = smov 256   ;;  %s572_s15 = smov 16  }
 0x205   : > { %421 = dma.vmem_to_hbm [thread:$0]  (%p816_p12), %s752_s12, 512, %s757_s25, %s317_s22, %s571_s14, %s571_s14, %s572_s15  }
 0x206 PF: > { %s345_s16 = sand.u32 1, %s552_s18   ;;  %p817_p13 = scmp.ne.s32.totalorder %s813_s6, 0 }
 0x207   : > { %p818_p4 = scmp.ge.s32.totalorder %s564_s21, 2  ;;  %s346_s8 = scalar_lea.sflag [#allocation4], %s345_s16 }
 0x209   : > { %p428_p5 = pnand %p818_p4, %p817_p13 }
 0x20b   : > { %p429_p7 = pneg %p428_p5 }
 0x20d   : > { %547 = dma.done.wait (%p429_p7), %s346_s8, 512  }
 0x20e   : > { %549 = vsyncadd (%p429_p7), %s346_s8, 4294966784  ;;  %p18_p8 = scmp.ge.s32.totalorder %s628_s24, 4   ;;  %s819_s18 = smov %s556_s19 }
 0x20f   : > { %s820_s19 = smov %s560_s20  ;;  %s821_s20 = smov %s640_s27 }
 0x210   : > { %s822_s21 = smov %s628_s24  ;;  %20 = sbr.rel (!%p18_p8) target bundleno = 5 (0x5), region = 85 }
 0x215   :  { %351 = vsyncpa [#allocation3], 1 }
 0x216   :  { %353 = vsyncpa [#allocation3 + $0x1], 1 }
 0x217   :  { %354 = vsyncpa [#allocation4], 1 }
 0x218   :  { %356 = vsyncpa [#allocation4 + $0x1], 1 }

</bundles_post_ra>
